<compile_context>
chip_gen: v7x
topology: tpu7x:2x2x1
jax: 0.10.0
libtpu: 0.0.40
codegen_flags: <defaults>
</compile_context>

<pallas_src>
import jax
import jax.numpy as jnp
from jax import lax
from jax.experimental import pallas as pl
from jax.experimental.pallas import tpu as pltpu

# ---- model hyper-parameters (small, consistent with the module) -------------
D_MODEL = 32
D_INNER = 64
N_HEAD = 4
D_K = 8
D_V = 8
LN_EPS = 1e-6

MAX_BATCH_TILE = 256                 # Bt*L = 2048 rows per grid step
VMEM_LIMIT_BYTES = 32 * 1024 * 1024  # safe on v5e/v6e, headroom on v7x


def _make_kernel(seq_len, mask_mode, return_attn):
    """Build the encoder-layer kernel.

    mask_mode: "none" | "key" ((Bt,1,L) key-padding mask) | "full" ((Bt,L,L)).
    return_attn: whether the attention-probability output exists.
    """
    L = seq_len
    hdk = N_HEAD * D_K

    def kernel(*refs):
        x_ref = refs[0]
        off = 1
        mask_ref = None
        if mask_mode != "none":
            mask_ref = refs[1]
            off = 2
        (wqkv_ref, wo_ref, ln1_g_ref, ln1_b_ref,
         w1_ref, b1_ref, w2_ref, b2_ref, ln2_g_ref, ln2_b_ref) = refs[off:off + 10]
        out_ref = refs[off + 10]
        attn_ref = refs[off + 11] if return_attn else None

        n, D = x_ref.shape            # n = bt * L  (row-flattened batch tile)
        bt = n // L

        x2 = x_ref[...].astype(jnp.float32)                        # (n, D)

        # ---- fused QKV projection (Q pre-scaled by 1/sqrt(d_k) in wrapper) ----
        qkv = jnp.dot(x2, wqkv_ref[...],
                      preferred_element_type=jnp.float32)           # (n, 3*H*dk)

        if mask_mode != "none":
            # "key": (bt,1,L) broadcast over queries; "full": (bt,L,L)
            bias = jnp.where(mask_ref[...] == 0,
                             jnp.float32(-1e9), jnp.float32(0.0))

        # ---- multi-head attention; residual folded into the accumulator ----
        o = x2                                                       # (n, D)
        attn_parts = []
        for h in range(N_HEAD):                                      # static, 4
            qh = qkv[:, h * D_K:(h + 1) * D_K].reshape(bt, L, D_K)
            kh = qkv[:, hdk + h * D_K: hdk + (h + 1) * D_K].reshape(bt, L, D_K)
            vh = qkv[:, 2 * hdk + h * D_V: 2 * hdk + (h + 1) * D_V].reshape(bt, L, D_V)

            s = jnp.einsum('bqd,bkd->bqk', qh, kh,
                           preferred_element_type=jnp.float32)       # (bt, L, L)
            if mask_mode != "none":
                s = s + bias

            m = jnp.max(s, axis=-1, keepdims=True)
            e = jnp.exp(s - m)
            denom = jnp.sum(e, axis=-1, keepdims=True)
            attn_h = e * pl.reciprocal(denom, approx=True)           # (bt, L, L)

            if return_attn:
                # (bt, L, L) -> (bt*L, L): leading-dim merge, no relayout.
                attn_parts.append(attn_h.reshape(n, L))

            hv = jnp.einsum('bqk,bkd->bqd', attn_h, vh,
                            preferred_element_type=jnp.float32)      # (bt, L, dv)
            # Per-head output projection, accumulated (no head concatenate).
            o = o + jnp.dot(hv.reshape(n, D_V),
                            wo_ref[h * D_V:(h + 1) * D_V, :],
                            preferred_element_type=jnp.float32)

        if return_attn:
            # One contiguous store per grid step: columns ordered (head, key).
            attn_ref[...] = jnp.concatenate(attn_parts, axis=-1)     # (n, H*L)

        # ---- residual + LayerNorm 1 (residual already inside `o`) ----
        mu1 = jnp.mean(o, axis=-1, keepdims=True)
        c1 = o - mu1
        var1 = jnp.mean(c1 * c1, axis=-1, keepdims=True)
        y1 = c1 * lax.rsqrt(var1 + LN_EPS) * ln1_g_ref[...] + ln1_b_ref[...]

        # ---- position-wise feed forward ----
        h1 = jnp.dot(y1, w1_ref[...], preferred_element_type=jnp.float32) + b1_ref[...]
        h1 = jnp.maximum(h1, 0.0)
        h2 = jnp.dot(h1, w2_ref[...], preferred_element_type=jnp.float32) + b2_ref[...]

        # ---- residual + LayerNorm 2 ----
        res2 = h2 + y1
        mu2 = jnp.mean(res2, axis=-1, keepdims=True)
        c2 = res2 - mu2
        var2 = jnp.mean(c2 * c2, axis=-1, keepdims=True)
        y2 = c2 * lax.rsqrt(var2 + LN_EPS) * ln2_g_ref[...] + ln2_b_ref[...]

        # Single full-block store of the layer output.
        out_ref[...] = y2.astype(out_ref.dtype)                      # (n, D)

    return kernel


def encoder_layer(enc_input, params, slf_attn_mask=None, *,
                  batch_tile=MAX_BATCH_TILE, return_attn=True,
                  v7x_core_parallel=False):
    """enc_input: (B, L, D_MODEL) float32.
       slf_attn_mask: optional; (B, L), (B, 1, L) or broadcastable to (B, L, L);
                      nonzero == keep.
       Returns (enc_output (B,L,D), enc_slf_attn (B,H,L,L) or None)."""
    B, L, D = enc_input.shape
    assert D == D_MODEL
    (wq, wk, wv, wo, ln1_g, ln1_b, w1, b1, w2, b2, ln2_g, ln2_b) = params

    # Fuse the three projections; fold the 1/sqrt(d_k) temperature into Q once.
    temperature = jnp.float32(D_K ** 0.5)
    wqkv = jnp.concatenate([wq / temperature, wk, wv], axis=1)   # (D, 3*H*dk)

    # ---- mask handling: never materialize a broadcast (B,L,L) for key masks ----
    if slf_attn_mask is None:
        mask_mode, mask = "none", None
    else:
        m = jnp.asarray(slf_attn_mask)
        if m.ndim == 2:
            m = m[:, None, :]
        if m.ndim == 3 and m.shape[-2] == 1:
            mask_mode = "key"
            mask = jnp.broadcast_to(m, (B, 1, L)).astype(jnp.int32)
        else:
            mask_mode = "full"
            mask = jnp.broadcast_to(m, (B, L, L)).astype(jnp.int32)

    bt = max(1, min(B, batch_tile))
    b_pad = ((B + bt - 1) // bt) * bt
    x = enc_input
    if b_pad != B:
        x = jnp.pad(x, ((0, b_pad - B), (0, 0), (0, 0)))
        if mask is not None:
            pad_widths = ((0, b_pad - B),) + ((0, 0),) * (mask.ndim - 1)
            mask = jnp.pad(mask, pad_widths, constant_values=1)

    # Row-flattened layout: rows = (batch, position).
    x2d = x.reshape(b_pad * L, D)
    grid = (b_pad // bt,)

    def const(a):
        return pl.BlockSpec(a.shape, lambda b, _a=a: (0,) * _a.ndim)

    in_specs = [pl.BlockSpec((bt * L, D), lambda b: (b, 0))]
    inputs = [x2d]
    if mask_mode == "key":
        in_specs.append(pl.BlockSpec((bt, 1, L), lambda b: (b, 0, 0)))
        inputs.append(mask)
    elif mask_mode == "full":
        in_specs.append(pl.BlockSpec((bt, L, L), lambda b: (b, 0, 0)))
        inputs.append(mask)
    weights = (wqkv, wo, ln1_g, ln1_b, w1, b1, w2, b2, ln2_g, ln2_b)
    in_specs += [const(w) for w in weights]
    inputs += list(weights)

    out_spec = pl.BlockSpec((bt * L, D), lambda b: (b, 0))
    out_struct = jax.ShapeDtypeStruct((b_pad * L, D), enc_input.dtype)
    if return_attn:
        out_specs = (out_spec,
                     pl.BlockSpec((bt * L, N_HEAD * L), lambda b: (b, 0)))
        out_shape = (out_struct,
                     jax.ShapeDtypeStruct((b_pad * L, N_HEAD * L), jnp.float32))
    else:
        out_specs = out_spec
        out_shape = out_struct

    if v7x_core_parallel:
        # Explicit cross-TensorCore split of the batch-tile axis (v7x).
        dim_sem = (pltpu.CORE_PARALLEL,)
    else:
        dim_sem = ("parallel",)

    fn = pl.pallas_call(
        _make_kernel(L, mask_mode, return_attn),
        out_shape=out_shape,
        grid_spec=pltpu.PrefetchScalarGridSpec(
            num_scalar_prefetch=0,
            grid=grid,
            in_specs=in_specs,
            out_specs=out_specs,
        ),
        compiler_params=pltpu.CompilerParams(
            dimension_semantics=dim_sem,
            vmem_limit_bytes=VMEM_LIMIT_BYTES),
    )
    res = fn(*inputs)
    if return_attn:
        out_flat, attn_flat = res
    else:
        out_flat, attn_flat = res, None

    out = out_flat.reshape(b_pad, L, D)[:B]
    attn = None
    if return_attn:
        # (b, q, h, k) -> (b, h, q, k): free wrapper-side XLA reshape/transpose.
        attn = attn_flat.reshape(b_pad, L, N_HEAD, L).transpose(0, 2, 1, 3)[:B]
    return out, attn


def init_params(key):
    """Deterministic synthetic parameters (shapes follow the nn.Module)."""
    ks = jax.random.split(key, 6)
    scale = 0.1
    wq = scale * jax.random.normal(ks[0], (D_MODEL, N_HEAD * D_K), jnp.float32)
    wk = scale * jax.random.normal(ks[1], (D_MODEL, N_HEAD * D_K), jnp.float32)
    wv = scale * jax.random.normal(ks[2], (D_MODEL, N_HEAD * D_V), jnp.float32)
    wo = scale * jax.random.normal(ks[3], (N_HEAD * D_V, D_MODEL), jnp.float32)
    ln1_g = jnp.ones((1, D_MODEL), jnp.float32)
    ln1_b = jnp.zeros((1, D_MODEL), jnp.float32)
    w1 = scale * jax.random.normal(ks[4], (D_MODEL, D_INNER), jnp.float32)
    b1 = jnp.zeros((1, D_INNER), jnp.float32)
    w2 = scale * jax.random.normal(ks[5], (D_INNER, D_MODEL), jnp.float32)
    b2 = jnp.zeros((1, D_MODEL), jnp.float32)
    ln2_g = jnp.ones((1, D_MODEL), jnp.float32)
    ln2_b = jnp.zeros((1, D_MODEL), jnp.float32)
    return (wq, wk, wv, wo, ln1_g, ln1_b, w1, b1, w2, b2, ln2_g, ln2_b)


def _reference(enc_input, params, mask=None):
    """Pure-JAX reference mirroring the PyTorch forward (eval mode)."""
    (wq, wk, wv, wo, ln1_g, ln1_b, w1, b1, w2, b2, ln2_g, ln2_b) = params
    B, L, D = enc_input.shape
    residual = enc_input
    q = (enc_input @ wq).reshape(B, L, N_HEAD, D_K).transpose(0, 2, 1, 3)
    k = (enc_input @ wk).reshape(B, L, N_HEAD, D_K).transpose(0, 2, 1, 3)
    v = (enc_input @ wv).reshape(B, L, N_HEAD, D_V).transpose(0, 2, 1, 3)
    scores = jnp.einsum("bhqd,bhkd->bhqk", q / (D_K ** 0.5), k)
    if mask is not None:
        scores = jnp.where(mask[:, None] == 0, -1e9, scores)
    attn = jax.nn.softmax(scores, axis=-1)
    o = jnp.einsum("bhqk,bhkd->bhqd", attn, v)
    o = o.transpose(0, 2, 1, 3).reshape(B, L, N_HEAD * D_V) @ wo
    x = o + residual
    mu = x.mean(-1, keepdims=True)
    var = ((x - mu) ** 2).mean(-1, keepdims=True)
    x = (x - mu) / jnp.sqrt(var + LN_EPS) * ln1_g[0] + ln1_b[0]
    residual2 = x
    h = jnp.maximum(x @ w1 + b1[0], 0.0) @ w2 + b2[0]
    x = h + residual2
    mu = x.mean(-1, keepdims=True)
    var = ((x - mu) ** 2).mean(-1, keepdims=True)
    x = (x - mu) / jnp.sqrt(var + LN_EPS) * ln2_g[0] + ln2_b[0]
    return x, attn


if __name__ == "__main__":
    key = jax.random.PRNGKey(0)
    k_param, k_x = jax.random.split(key)

    B, L = 2, 8
    enc_input = jax.random.normal(k_x, (B, L, D_MODEL), jnp.float32)
    params = init_params(k_param)

    # Tolerances: approx=True softmax reciprocal introduces ~1e-4-level error.
    ATOL = 2e-3
    RTOL = 2e-3

    # ---- unmasked path (no-mask kernel variant: no mask DMA / compare) ----
    enc_output, enc_slf_attn = encoder_layer(enc_input, params, slf_attn_mask=None)
    jax.block_until_ready((enc_output, enc_slf_attn))

    ref_out, ref_attn = _reference(enc_input, params, mask=None)
    assert enc_output.shape == (B, L, D_MODEL)
    assert enc_slf_attn.shape == (B, N_HEAD, L, L)
    assert jnp.allclose(enc_output, ref_out, atol=ATOL, rtol=RTOL)
    assert jnp.allclose(enc_slf_attn, ref_attn, atol=ATOL, rtol=RTOL)

    # ---- key-padding mask passed at its natural (B, 1, L) shape ----
    lens = jnp.array([L, 5])
    key_mask = (jnp.arange(L)[None, None, :] < lens[:, None, None]).astype(jnp.int32)  # (B,1,L)
    out_m, attn_m = encoder_layer(enc_input, params, slf_attn_mask=key_mask)
    jax.block_until_ready((out_m, attn_m))

    full_mask = jnp.broadcast_to(key_mask, (B, L, L))
    ref_out_m, ref_attn_m = _reference(enc_input, params, mask=full_mask)
    assert jnp.allclose(out_m, ref_out_m, atol=ATOL, rtol=RTOL)
    assert jnp.allclose(attn_m, ref_attn_m, atol=ATOL, rtol=RTOL)

    # ---- general (B, L, L) mask path (same semantics, full-mask kernel) ----
    out_f, attn_f = encoder_layer(enc_input, params, slf_attn_mask=full_mask)
    jax.block_until_ready((out_f, attn_f))
    assert jnp.allclose(out_f, ref_out_m, atol=ATOL, rtol=RTOL)
    assert jnp.allclose(attn_f, ref_attn_m, atol=ATOL, rtol=RTOL)

    # ---- attention-probabilities output elided (saves its HBM write traffic) ----
    out_na, attn_na = encoder_layer(enc_input, params, return_attn=False)
    jax.block_until_ready(out_na)
    assert attn_na is None
    assert jnp.allclose(out_na, enc_output, atol=1e-5, rtol=1e-5)

    print("KERNEL_OK")
</pallas_src>

<mosaic_0001>
module attributes {stable_mosaic.version = 11 : i64} {
  func.func @kernel(%arg0: i32, %arg1: memref<16x32xf32, #tpu.memory_space<vmem>>, %arg2: memref<32x96xf32, #tpu.memory_space<vmem>>, %arg3: memref<32x32xf32, #tpu.memory_space<vmem>>, %arg4: memref<1x32xf32, #tpu.memory_space<vmem>>, %arg5: memref<1x32xf32, #tpu.memory_space<vmem>>, %arg6: memref<32x64xf32, #tpu.memory_space<vmem>>, %arg7: memref<1x64xf32, #tpu.memory_space<vmem>>, %arg8: memref<64x32xf32, #tpu.memory_space<vmem>>, %arg9: memref<1x32xf32, #tpu.memory_space<vmem>>, %arg10: memref<1x32xf32, #tpu.memory_space<vmem>>, %arg11: memref<1x32xf32, #tpu.memory_space<vmem>>, %arg12: memref<16x32xf32, #tpu.memory_space<vmem>>, %arg13: memref<16x32xf32, #tpu.memory_space<vmem>>) attributes {dimension_semantics = [#tpu.dimension_semantics<parallel>], iteration_bounds = array<i64: 1>, scalar_prefetch = 0 : i64, scratch_operands = 0 : i64, tpu.core_type = #tpu.core_type<tc>, window_params = [{transform_indices = @transform_0, window_bounds = array<i64: 16, 32>}, {pipeline_mode = #tpu.pipeline_mode<synchronous>, transform_indices = @transform_1, window_bounds = array<i64: 32, 96>}, {pipeline_mode = #tpu.pipeline_mode<synchronous>, transform_indices = @transform_2, window_bounds = array<i64: 32, 32>}, {pipeline_mode = #tpu.pipeline_mode<synchronous>, transform_indices = @transform_3, window_bounds = array<i64: 1, 32>}, {pipeline_mode = #tpu.pipeline_mode<synchronous>, transform_indices = @transform_4, window_bounds = array<i64: 1, 32>}, {pipeline_mode = #tpu.pipeline_mode<synchronous>, transform_indices = @transform_5, window_bounds = array<i64: 32, 64>}, {pipeline_mode = #tpu.pipeline_mode<synchronous>, transform_indices = @transform_6, window_bounds = array<i64: 1, 64>}, {pipeline_mode = #tpu.pipeline_mode<synchronous>, transform_indices = @transform_7, window_bounds = array<i64: 64, 32>}, {pipeline_mode = #tpu.pipeline_mode<synchronous>, transform_indices = @transform_8, window_bounds = array<i64: 1, 32>}, {pipeline_mode = #tpu.pipeline_mode<synchronous>, transform_indices = @transform_9, window_bounds = array<i64: 1, 32>}, {pipeline_mode = #tpu.pipeline_mode<synchronous>, transform_indices = @transform_10, window_bounds = array<i64: 1, 32>}, {transform_indices = @transform_11, window_bounds = array<i64: 16, 32>}, {transform_indices = @transform_12, window_bounds = array<i64: 16, 32>}]} {
    %c0 = arith.constant 0 : index
    %c0_0 = arith.constant 0 : index
    %0 = vector.load %arg1[%c0, %c0_0] : memref<16x32xf32, #tpu.memory_space<vmem>>, vector<16x32xf32>
    %c0_1 = arith.constant 0 : index
    %c0_2 = arith.constant 0 : index
    %1 = vector.load %arg2[%c0_1, %c0_2] : memref<32x96xf32, #tpu.memory_space<vmem>>, vector<32x96xf32>
    %cst = arith.constant dense<0.000000e+00> : vector<16x96xf32>
    %2 = tpu.matmul %0, %1, %cst {dimension_numbers = #tpu.dot_dimension_numbers<[1], [0], [0], [1], [0, 0, 1, 1], [], []>} : vector<16x32xf32>, vector<32x96xf32>, vector<16x96xf32> -> vector<16x96xf32>
    %3 = vector.extract_strided_slice %2 {offsets = [0, 0], sizes = [16, 8], strides = [1, 1]} : vector<16x96xf32> to vector<16x8xf32>
    %4 = vector.shape_cast %3 : vector<16x8xf32> to vector<2x8x8xf32>
    %5 = vector.extract_strided_slice %2 {offsets = [0, 32], sizes = [16, 8], strides = [1, 1]} : vector<16x96xf32> to vector<16x8xf32>
    %6 = vector.shape_cast %5 : vector<16x8xf32> to vector<2x8x8xf32>
    %7 = vector.extract_strided_slice %2 {offsets = [0, 64], sizes = [16, 8], strides = [1, 1]} : vector<16x96xf32> to vector<16x8xf32>
    %8 = vector.shape_cast %7 : vector<16x8xf32> to vector<2x8x8xf32>
    "tpu.trace_start"() <{level = 10 : i32, message = "bqd,bkd->bqk"}> : () -> ()
    %cst_3 = arith.constant dense<0.000000e+00> : vector<2x8x8xf32>
    %9 = tpu.matmul %4, %6, %cst_3 {dimension_numbers = #tpu.dot_dimension_numbers<[2], [2], [1], [1], [0, 0, 0, 1, 1, 1], [0], [0]>} : vector<2x8x8xf32>, vector<2x8x8xf32>, vector<2x8x8xf32> -> vector<2x8x8xf32>
    "tpu.trace_stop"() : () -> ()
    %cst_4 = arith.constant dense<0xFF800000> : vector<2x8xf32>
    %10 = vector.multi_reduction <maximumf>, %9, %cst_4 [2] : vector<2x8x8xf32> to vector<2x8xf32>
    %11 = vector.shape_cast %10 : vector<2x8xf32> to vector<2x8x1xf32>
    %12 = vector.broadcast %11 : vector<2x8x1xf32> to vector<2x8x8xf32>
    %13 = arith.subf %9, %12 : vector<2x8x8xf32>
    %14 = math.exp %13 : vector<2x8x8xf32>
    %cst_5 = arith.constant dense<0.000000e+00> : vector<2x8xf32>
    %15 = vector.multi_reduction <add>, %14, %cst_5 [2] : vector<2x8x8xf32> to vector<2x8xf32>
    %16 = vector.shape_cast %15 : vector<2x8xf32> to vector<2x8x1xf32>
    %17 = tpu.reciprocal %16 {approx = true} : vector<2x8x1xf32> -> vector<2x8x1xf32>
    %18 = vector.broadcast %17 : vector<2x8x1xf32> to vector<2x8x8xf32>
    %19 = arith.mulf %14, %18 : vector<2x8x8xf32>
    %20 = vector.shape_cast %19 : vector<2x8x8xf32> to vector<16x8xf32>
    "tpu.trace_start"() <{level = 10 : i32, message = "bqk,bkd->bqd"}> : () -> ()
    %cst_6 = arith.constant dense<0.000000e+00> : vector<2x8x8xf32>
    %21 = tpu.matmul %19, %8, %cst_6 {dimension_numbers = #tpu.dot_dimension_numbers<[2], [1], [1], [2], [0, 0, 0, 1, 1, 2], [0], [0]>} : vector<2x8x8xf32>, vector<2x8x8xf32>, vector<2x8x8xf32> -> vector<2x8x8xf32>
    "tpu.trace_stop"() : () -> ()
    %22 = vector.shape_cast %21 : vector<2x8x8xf32> to vector<16x8xf32>
    %c0_7 = arith.constant 0 : index
    %c0_8 = arith.constant 0 : index
    %23 = vector.load %arg3[%c0_7, %c0_8] : memref<32x32xf32, #tpu.memory_space<vmem>>, vector<8x32xf32>
    %cst_9 = arith.constant dense<0.000000e+00> : vector<16x32xf32>
    %24 = tpu.matmul %22, %23, %cst_9 {dimension_numbers = #tpu.dot_dimension_numbers<[1], [0], [0], [1], [0, 0, 1, 1], [], []>} : vector<16x8xf32>, vector<8x32xf32>, vector<16x32xf32> -> vector<16x32xf32>
    %25 = arith.addf %0, %24 : vector<16x32xf32>
    %26 = vector.extract_strided_slice %2 {offsets = [0, 8], sizes = [16, 8], strides = [1, 1]} : vector<16x96xf32> to vector<16x8xf32>
    %27 = vector.shape_cast %26 : vector<16x8xf32> to vector<2x8x8xf32>
    %28 = vector.extract_strided_slice %2 {offsets = [0, 40], sizes = [16, 8], strides = [1, 1]} : vector<16x96xf32> to vector<16x8xf32>
    %29 = vector.shape_cast %28 : vector<16x8xf32> to vector<2x8x8xf32>
    %30 = vector.extract_strided_slice %2 {offsets = [0, 72], sizes = [16, 8], strides = [1, 1]} : vector<16x96xf32> to vector<16x8xf32>
    %31 = vector.shape_cast %30 : vector<16x8xf32> to vector<2x8x8xf32>
    "tpu.trace_start"() <{level = 10 : i32, message = "bqd,bkd->bqk"}> : () -> ()
    %cst_10 = arith.constant dense<0.000000e+00> : vector<2x8x8xf32>
    %32 = tpu.matmul %27, %29, %cst_10 {dimension_numbers = #tpu.dot_dimension_numbers<[2], [2], [1], [1], [0, 0, 0, 1, 1, 1], [0], [0]>} : vector<2x8x8xf32>, vector<2x8x8xf32>, vector<2x8x8xf32> -> vector<2x8x8xf32>
    "tpu.trace_stop"() : () -> ()
    %cst_11 = arith.constant dense<0xFF800000> : vector<2x8xf32>
    %33 = vector.multi_reduction <maximumf>, %32, %cst_11 [2] : vector<2x8x8xf32> to vector<2x8xf32>
    %34 = vector.shape_cast %33 : vector<2x8xf32> to vector<2x8x1xf32>
    %35 = vector.broadcast %34 : vector<2x8x1xf32> to vector<2x8x8xf32>
    %36 = arith.subf %32, %35 : vector<2x8x8xf32>
    %37 = math.exp %36 : vector<2x8x8xf32>
    %cst_12 = arith.constant dense<0.000000e+00> : vector<2x8xf32>
    %38 = vector.multi_reduction <add>, %37, %cst_12 [2] : vector<2x8x8xf32> to vector<2x8xf32>
    %39 = vector.shape_cast %38 : vector<2x8xf32> to vector<2x8x1xf32>
    %40 = tpu.reciprocal %39 {approx = true} : vector<2x8x1xf32> -> vector<2x8x1xf32>
    %41 = vector.broadcast %40 : vector<2x8x1xf32> to vector<2x8x8xf32>
    %42 = arith.mulf %37, %41 : vector<2x8x8xf32>
    %43 = vector.shape_cast %42 : vector<2x8x8xf32> to vector<16x8xf32>
    "tpu.trace_start"() <{level = 10 : i32, message = "bqk,bkd->bqd"}> : () -> ()
    %cst_13 = arith.constant dense<0.000000e+00> : vector<2x8x8xf32>
    %44 = tpu.matmul %42, %31, %cst_13 {dimension_numbers = #tpu.dot_dimension_numbers<[2], [1], [1], [2], [0, 0, 0, 1, 1, 2], [0], [0]>} : vector<2x8x8xf32>, vector<2x8x8xf32>, vector<2x8x8xf32> -> vector<2x8x8xf32>
    "tpu.trace_stop"() : () -> ()
    %45 = vector.shape_cast %44 : vector<2x8x8xf32> to vector<16x8xf32>
    %c8 = arith.constant 8 : index
    %c0_14 = arith.constant 0 : index
    %46 = vector.load %arg3[%c8, %c0_14] : memref<32x32xf32, #tpu.memory_space<vmem>>, vector<8x32xf32>
    %cst_15 = arith.constant dense<0.000000e+00> : vector<16x32xf32>
    %47 = tpu.matmul %45, %46, %cst_15 {dimension_numbers = #tpu.dot_dimension_numbers<[1], [0], [0], [1], [0, 0, 1, 1], [], []>} : vector<16x8xf32>, vector<8x32xf32>, vector<16x32xf32> -> vector<16x32xf32>
    %48 = arith.addf %25, %47 : vector<16x32xf32>
    %49 = vector.extract_strided_slice %2 {offsets = [0, 16], sizes = [16, 8], strides = [1, 1]} : vector<16x96xf32> to vector<16x8xf32>
    %50 = vector.shape_cast %49 : vector<16x8xf32> to vector<2x8x8xf32>
    %51 = vector.extract_strided_slice %2 {offsets = [0, 48], sizes = [16, 8], strides = [1, 1]} : vector<16x96xf32> to vector<16x8xf32>
    %52 = vector.shape_cast %51 : vector<16x8xf32> to vector<2x8x8xf32>
    %53 = vector.extract_strided_slice %2 {offsets = [0, 80], sizes = [16, 8], strides = [1, 1]} : vector<16x96xf32> to vector<16x8xf32>
    %54 = vector.shape_cast %53 : vector<16x8xf32> to vector<2x8x8xf32>
    "tpu.trace_start"() <{level = 10 : i32, message = "bqd,bkd->bqk"}> : () -> ()
    %cst_16 = arith.constant dense<0.000000e+00> : vector<2x8x8xf32>
    %55 = tpu.matmul %50, %52, %cst_16 {dimension_numbers = #tpu.dot_dimension_numbers<[2], [2], [1], [1], [0, 0, 0, 1, 1, 1], [0], [0]>} : vector<2x8x8xf32>, vector<2x8x8xf32>, vector<2x8x8xf32> -> vector<2x8x8xf32>
    "tpu.trace_stop"() : () -> ()
    %cst_17 = arith.constant dense<0xFF800000> : vector<2x8xf32>
    %56 = vector.multi_reduction <maximumf>, %55, %cst_17 [2] : vector<2x8x8xf32> to vector<2x8xf32>
    %57 = vector.shape_cast %56 : vector<2x8xf32> to vector<2x8x1xf32>
    %58 = vector.broadcast %57 : vector<2x8x1xf32> to vector<2x8x8xf32>
    %59 = arith.subf %55, %58 : vector<2x8x8xf32>
    %60 = math.exp %59 : vector<2x8x8xf32>
    %cst_18 = arith.constant dense<0.000000e+00> : vector<2x8xf32>
    %61 = vector.multi_reduction <add>, %60, %cst_18 [2] : vector<2x8x8xf32> to vector<2x8xf32>
    %62 = vector.shape_cast %61 : vector<2x8xf32> to vector<2x8x1xf32>
    %63 = tpu.reciprocal %62 {approx = true} : vector<2x8x1xf32> -> vector<2x8x1xf32>
    %64 = vector.broadcast %63 : vector<2x8x1xf32> to vector<2x8x8xf32>
    %65 = arith.mulf %60, %64 : vector<2x8x8xf32>
    %66 = vector.shape_cast %65 : vector<2x8x8xf32> to vector<16x8xf32>
    "tpu.trace_start"() <{level = 10 : i32, message = "bqk,bkd->bqd"}> : () -> ()
    %cst_19 = arith.constant dense<0.000000e+00> : vector<2x8x8xf32>
    %67 = tpu.matmul %65, %54, %cst_19 {dimension_numbers = #tpu.dot_dimension_numbers<[2], [1], [1], [2], [0, 0, 0, 1, 1, 2], [0], [0]>} : vector<2x8x8xf32>, vector<2x8x8xf32>, vector<2x8x8xf32> -> vector<2x8x8xf32>
    "tpu.trace_stop"() : () -> ()
    %68 = vector.shape_cast %67 : vector<2x8x8xf32> to vector<16x8xf32>
    %c16 = arith.constant 16 : index
    %c0_20 = arith.constant 0 : index
    %69 = vector.load %arg3[%c16, %c0_20] : memref<32x32xf32, #tpu.memory_space<vmem>>, vector<8x32xf32>
    %cst_21 = arith.constant dense<0.000000e+00> : vector<16x32xf32>
    %70 = tpu.matmul %68, %69, %cst_21 {dimension_numbers = #tpu.dot_dimension_numbers<[1], [0], [0], [1], [0, 0, 1, 1], [], []>} : vector<16x8xf32>, vector<8x32xf32>, vector<16x32xf32> -> vector<16x32xf32>
    %71 = arith.addf %48, %70 : vector<16x32xf32>
    %72 = vector.extract_strided_slice %2 {offsets = [0, 24], sizes = [16, 8], strides = [1, 1]} : vector<16x96xf32> to vector<16x8xf32>
    %73 = vector.shape_cast %72 : vector<16x8xf32> to vector<2x8x8xf32>
    %74 = vector.extract_strided_slice %2 {offsets = [0, 56], sizes = [16, 8], strides = [1, 1]} : vector<16x96xf32> to vector<16x8xf32>
    %75 = vector.shape_cast %74 : vector<16x8xf32> to vector<2x8x8xf32>
    %76 = vector.extract_strided_slice %2 {offsets = [0, 88], sizes = [16, 8], strides = [1, 1]} : vector<16x96xf32> to vector<16x8xf32>
    %77 = vector.shape_cast %76 : vector<16x8xf32> to vector<2x8x8xf32>
    "tpu.trace_start"() <{level = 10 : i32, message = "bqd,bkd->bqk"}> : () -> ()
    %cst_22 = arith.constant dense<0.000000e+00> : vector<2x8x8xf32>
    %78 = tpu.matmul %73, %75, %cst_22 {dimension_numbers = #tpu.dot_dimension_numbers<[2], [2], [1], [1], [0, 0, 0, 1, 1, 1], [0], [0]>} : vector<2x8x8xf32>, vector<2x8x8xf32>, vector<2x8x8xf32> -> vector<2x8x8xf32>
    "tpu.trace_stop"() : () -> ()
    %cst_23 = arith.constant dense<0xFF800000> : vector<2x8xf32>
    %79 = vector.multi_reduction <maximumf>, %78, %cst_23 [2] : vector<2x8x8xf32> to vector<2x8xf32>
    %80 = vector.shape_cast %79 : vector<2x8xf32> to vector<2x8x1xf32>
    %81 = vector.broadcast %80 : vector<2x8x1xf32> to vector<2x8x8xf32>
    %82 = arith.subf %78, %81 : vector<2x8x8xf32>
    %83 = math.exp %82 : vector<2x8x8xf32>
    %cst_24 = arith.constant dense<0.000000e+00> : vector<2x8xf32>
    %84 = vector.multi_reduction <add>, %83, %cst_24 [2] : vector<2x8x8xf32> to vector<2x8xf32>
    %85 = vector.shape_cast %84 : vector<2x8xf32> to vector<2x8x1xf32>
    %86 = tpu.reciprocal %85 {approx = true} : vector<2x8x1xf32> -> vector<2x8x1xf32>
    %87 = vector.broadcast %86 : vector<2x8x1xf32> to vector<2x8x8xf32>
    %88 = arith.mulf %83, %87 : vector<2x8x8xf32>
    %89 = vector.shape_cast %88 : vector<2x8x8xf32> to vector<16x8xf32>
    "tpu.trace_start"() <{level = 10 : i32, message = "bqk,bkd->bqd"}> : () -> ()
    %cst_25 = arith.constant dense<0.000000e+00> : vector<2x8x8xf32>
    %90 = tpu.matmul %88, %77, %cst_25 {dimension_numbers = #tpu.dot_dimension_numbers<[2], [1], [1], [2], [0, 0, 0, 1, 1, 2], [0], [0]>} : vector<2x8x8xf32>, vector<2x8x8xf32>, vector<2x8x8xf32> -> vector<2x8x8xf32>
    "tpu.trace_stop"() : () -> ()
    %91 = vector.shape_cast %90 : vector<2x8x8xf32> to vector<16x8xf32>
    %c24 = arith.constant 24 : index
    %c0_26 = arith.constant 0 : index
    %92 = vector.load %arg3[%c24, %c0_26] : memref<32x32xf32, #tpu.memory_space<vmem>>, vector<8x32xf32>
    %cst_27 = arith.constant dense<0.000000e+00> : vector<16x32xf32>
    %93 = tpu.matmul %91, %92, %cst_27 {dimension_numbers = #tpu.dot_dimension_numbers<[1], [0], [0], [1], [0, 0, 1, 1], [], []>} : vector<16x8xf32>, vector<8x32xf32>, vector<16x32xf32> -> vector<16x32xf32>
    %94 = arith.addf %71, %93 : vector<16x32xf32>
    %95 = tpu.concatenate %20, %43, %66, %89 in 1 : vector<16x8xf32>, vector<16x8xf32>, vector<16x8xf32>, vector<16x8xf32> -> vector<16x32xf32>
    %c0_28 = arith.constant 0 : index
    %c0_29 = arith.constant 0 : index
    %96 = vector.load %arg13[%c0_28, %c0_29] : memref<16x32xf32, #tpu.memory_space<vmem>>, vector<16x32xf32>
    tpu.vector_store %arg13[%c0_28, %c0_29], %95 {strides = array<i32>} : memref<16x32xf32, #tpu.memory_space<vmem>>, vector<16x32xf32>,
    %cst_30 = arith.constant dense<0.000000e+00> : vector<16xf32>
    %97 = vector.multi_reduction <add>, %94, %cst_30 [1] : vector<16x32xf32> to vector<16xf32>
    %98 = vector.shape_cast %97 : vector<16xf32> to vector<16x1xf32>
    %cst_31 = arith.constant 3.200000e+01 : f32
    %99 = vector.broadcast %cst_31 : f32 to vector<16x1xf32>
    %100 = arith.divf %98, %99 : vector<16x1xf32>
    %101 = vector.broadcast %100 : vector<16x1xf32> to vector<16x32xf32>
    %102 = arith.subf %94, %101 : vector<16x32xf32>
    %103 = arith.mulf %102, %102 : vector<16x32xf32>
    %cst_32 = arith.constant dense<0.000000e+00> : vector<16xf32>
    %104 = vector.multi_reduction <add>, %103, %cst_32 [1] : vector<16x32xf32> to vector<16xf32>
    %105 = vector.shape_cast %104 : vector<16xf32> to vector<16x1xf32>
    %cst_33 = arith.constant 3.200000e+01 : f32
    %106 = vector.broadcast %cst_33 : f32 to vector<16x1xf32>
    %107 = arith.divf %105, %106 : vector<16x1xf32>
    %cst_34 = arith.constant 9.99999997E-7 : f32
    %108 = vector.broadcast %cst_34 : f32 to vector<16x1xf32>
    %109 = arith.addf %107, %108 : vector<16x1xf32>
    %110 = math.rsqrt %109 : vector<16x1xf32>
    %111 = vector.broadcast %110 : vector<16x1xf32> to vector<16x32xf32>
    %112 = arith.mulf %102, %111 : vector<16x32xf32>
    %c0_35 = arith.constant 0 : index
    %c0_36 = arith.constant 0 : index
    %113 = vector.load %arg4[%c0_35, %c0_36] : memref<1x32xf32, #tpu.memory_space<vmem>>, vector<1x32xf32>
    %114 = vector.broadcast %113 : vector<1x32xf32> to vector<16x32xf32>
    %115 = arith.mulf %112, %114 : vector<16x32xf32>
    %c0_37 = arith.constant 0 : index
    %c0_38 = arith.constant 0 : index
    %116 = vector.load %arg5[%c0_37, %c0_38] : memref<1x32xf32, #tpu.memory_space<vmem>>, vector<1x32xf32>
    %117 = vector.broadcast %116 : vector<1x32xf32> to vector<16x32xf32>
    %118 = arith.addf %115, %117 : vector<16x32xf32>
    %c0_39 = arith.constant 0 : index
    %c0_40 = arith.constant 0 : index
    %119 = vector.load %arg6[%c0_39, %c0_40] : memref<32x64xf32, #tpu.memory_space<vmem>>, vector<32x64xf32>
    %cst_41 = arith.constant dense<0.000000e+00> : vector<16x64xf32>
    %120 = tpu.matmul %118, %119, %cst_41 {dimension_numbers = #tpu.dot_dimension_numbers<[1], [0], [0], [1], [0, 0, 1, 1], [], []>} : vector<16x32xf32>, vector<32x64xf32>, vector<16x64xf32> -> vector<16x64xf32>
    %c0_42 = arith.constant 0 : index
    %c0_43 = arith.constant 0 : index
    %121 = vector.load %arg7[%c0_42, %c0_43] : memref<1x64xf32, #tpu.memory_space<vmem>>, vector<1x64xf32>
    %122 = vector.broadcast %121 : vector<1x64xf32> to vector<16x64xf32>
    %123 = arith.addf %120, %122 : vector<16x64xf32>
    %cst_44 = arith.constant 0.000000e+00 : f32
    %124 = vector.broadcast %cst_44 : f32 to vector<16x64xf32>
    %125 = arith.maximumf %123, %124 : vector<16x64xf32>
    %c0_45 = arith.constant 0 : index
    %c0_46 = arith.constant 0 : index
    %126 = vector.load %arg8[%c0_45, %c0_46] : memref<64x32xf32, #tpu.memory_space<vmem>>, vector<64x32xf32>
    %cst_47 = arith.constant dense<0.000000e+00> : vector<16x32xf32>
    %127 = tpu.matmul %125, %126, %cst_47 {dimension_numbers = #tpu.dot_dimension_numbers<[1], [0], [0], [1], [0, 0, 1, 1], [], []>} : vector<16x64xf32>, vector<64x32xf32>, vector<16x32xf32> -> vector<16x32xf32>
    %c0_48 = arith.constant 0 : index
    %c0_49 = arith.constant 0 : index
    %128 = vector.load %arg9[%c0_48, %c0_49] : memref<1x32xf32, #tpu.memory_space<vmem>>, vector<1x32xf32>
    %129 = vector.broadcast %128 : vector<1x32xf32> to vector<16x32xf32>
    %130 = arith.addf %127, %129 : vector<16x32xf32>
    %131 = arith.addf %130, %118 : vector<16x32xf32>
    %cst_50 = arith.constant dense<0.000000e+00> : vector<16xf32>
    %132 = vector.multi_reduction <add>, %131, %cst_50 [1] : vector<16x32xf32> to vector<16xf32>
    %133 = vector.shape_cast %132 : vector<16xf32> to vector<16x1xf32>
    %cst_51 = arith.constant 3.200000e+01 : f32
    %134 = vector.broadcast %cst_51 : f32 to vector<16x1xf32>
    %135 = arith.divf %133, %134 : vector<16x1xf32>
    %136 = vector.broadcast %135 : vector<16x1xf32> to vector<16x32xf32>
    %137 = arith.subf %131, %136 : vector<16x32xf32>
    %138 = arith.mulf %137, %137 : vector<16x32xf32>
    %cst_52 = arith.constant dense<0.000000e+00> : vector<16xf32>
    %139 = vector.multi_reduction <add>, %138, %cst_52 [1] : vector<16x32xf32> to vector<16xf32>
    %140 = vector.shape_cast %139 : vector<16xf32> to vector<16x1xf32>
    %cst_53 = arith.constant 3.200000e+01 : f32
    %141 = vector.broadcast %cst_53 : f32 to vector<16x1xf32>
    %142 = arith.divf %140, %141 : vector<16x1xf32>
    %cst_54 = arith.constant 9.99999997E-7 : f32
    %143 = vector.broadcast %cst_54 : f32 to vector<16x1xf32>
    %144 = arith.addf %142, %143 : vector<16x1xf32>
    %145 = math.rsqrt %144 : vector<16x1xf32>
    %146 = vector.broadcast %145 : vector<16x1xf32> to vector<16x32xf32>
    %147 = arith.mulf %137, %146 : vector<16x32xf32>
    %c0_55 = arith.constant 0 : index
    %c0_56 = arith.constant 0 : index
    %148 = vector.load %arg10[%c0_55, %c0_56] : memref<1x32xf32, #tpu.memory_space<vmem>>, vector<1x32xf32>
    %149 = vector.broadcast %148 : vector<1x32xf32> to vector<16x32xf32>
    %150 = arith.mulf %147, %149 : vector<16x32xf32>
    %c0_57 = arith.constant 0 : index
    %c0_58 = arith.constant 0 : index
    %151 = vector.load %arg11[%c0_57, %c0_58] : memref<1x32xf32, #tpu.memory_space<vmem>>, vector<1x32xf32>
    %152 = vector.broadcast %151 : vector<1x32xf32> to vector<16x32xf32>
    %153 = arith.addf %150, %152 : vector<16x32xf32>
    %c0_59 = arith.constant 0 : index
    %c0_60 = arith.constant 0 : index
    %154 = vector.load %arg12[%c0_59, %c0_60] : memref<16x32xf32, #tpu.memory_space<vmem>>, vector<16x32xf32>
    tpu.vector_store %arg12[%c0_59, %c0_60], %153 {strides = array<i32>} : memref<16x32xf32, #tpu.memory_space<vmem>>, vector<16x32xf32>,
    return
  }
  func.func @transform_0(%arg0: i32) -> (i32, i32) {
    %c0_i32 = arith.constant 0 : i32
    %c0_i32_0 = arith.constant 0 : i32
    return %arg0, %c0_i32 : i32, i32
  }
  func.func @transform_1(%arg0: i32) -> (i32, i32) {
    %c0_i32 = arith.constant 0 : i32
    %c0_i32_0 = arith.constant 0 : i32
    %c0_i32_1 = arith.constant 0 : i32
    return %c0_i32, %c0_i32_0 : i32, i32
  }
  func.func @transform_2(%arg0: i32) -> (i32, i32) {
    %c0_i32 = arith.constant 0 : i32
    %c0_i32_0 = arith.constant 0 : i32
    %c0_i32_1 = arith.constant 0 : i32
    return %c0_i32, %c0_i32_0 : i32, i32
  }
  func.func @transform_3(%arg0: i32) -> (i32, i32) {
    %c0_i32 = arith.constant 0 : i32
    %c0_i32_0 = arith.constant 0 : i32
    %c0_i32_1 = arith.constant 0 : i32
    return %c0_i32, %c0_i32_0 : i32, i32
  }
  func.func @transform_4(%arg0: i32) -> (i32, i32) {
    %c0_i32 = arith.constant 0 : i32
    %c0_i32_0 = arith.constant 0 : i32
    %c0_i32_1 = arith.constant 0 : i32
    return %c0_i32, %c0_i32_0 : i32, i32
  }
  func.func @transform_5(%arg0: i32) -> (i32, i32) {
    %c0_i32 = arith.constant 0 : i32
    %c0_i32_0 = arith.constant 0 : i32
    %c0_i32_1 = arith.constant 0 : i32
    return %c0_i32, %c0_i32_0 : i32, i32
  }
  func.func @transform_6(%arg0: i32) -> (i32, i32) {
    %c0_i32 = arith.constant 0 : i32
    %c0_i32_0 = arith.constant 0 : i32
    %c0_i32_1 = arith.constant 0 : i32
    return %c0_i32, %c0_i32_0 : i32, i32
  }
  func.func @transform_7(%arg0: i32) -> (i32, i32) {
    %c0_i32 = arith.constant 0 : i32
    %c0_i32_0 = arith.constant 0 : i32
    %c0_i32_1 = arith.constant 0 : i32
    return %c0_i32, %c0_i32_0 : i32, i32
  }
  func.func @transform_8(%arg0: i32) -> (i32, i32) {
    %c0_i32 = arith.constant 0 : i32
    %c0_i32_0 = arith.constant 0 : i32
    %c0_i32_1 = arith.constant 0 : i32
    return %c0_i32, %c0_i32_0 : i32, i32
  }
  func.func @transform_9(%arg0: i32) -> (i32, i32) {
    %c0_i32 = arith.constant 0 : i32
    %c0_i32_0 = arith.constant 0 : i32
    %c0_i32_1 = arith.constant 0 : i32
    return %c0_i32, %c0_i32_0 : i32, i32
  }
  func.func @transform_10(%arg0: i32) -> (i32, i32) {
    %c0_i32 = arith.constant 0 : i32
    %c0_i32_0 = arith.constant 0 : i32
    %c0_i32_1 = arith.constant 0 : i32
    return %c0_i32, %c0_i32_0 : i32, i32
  }
  func.func @transform_11(%arg0: i32) -> (i32, i32) {
    %c0_i32 = arith.constant 0 : i32
    %c0_i32_0 = arith.constant 0 : i32
    return %arg0, %c0_i32 : i32, i32
  }
  func.func @transform_12(%arg0: i32) -> (i32, i32) {
    %c0_i32 = arith.constant 0 : i32
    %c0_i32_0 = arith.constant 0 : i32
    return %arg0, %c0_i32 : i32, i32
  }
}

</mosaic_0001>

<bundles_post_ra>
// kernel: tpu_custom_call.1
= control target key start
LH: loop header
LB: loop body
LE: loop exit
PB: predicated region body
PF: predicated region fallthrough
CT: control target
= control target key end

     0   :  { %18 = vsyncpa [#allocation3], 0  ;;  %s2965_s0 = inlined_call_operand.hbm [shape: f32[16,32], index: 0, kind: input, shape index: {}]   ;;  %s2966_s1 = inlined_call_operand.vmem [shape: f32[32,96], index: 1, kind: input, shape index: {}]   ;;  %s2967_s2 = inlined_call_operand.vmem [shape: f32[32,32], index: 2, kind: input, shape index: {}]   ;;  %s2968_s3 = inlined_call_operand.vmem [shape: f32[1,32], index: 3, kind: input, shape index: {}]   ;;  %s2969_s4 = inlined_call_operand.vmem [shape: f32[1,32], index: 4, kind: input, shape index: {}]   ;;  %s2970_s5 = inlined_call_operand.vmem [shape: f32[32,64], index: 5, kind: input, shape index: {}]   ;;  %s2971_s6 = inlined_call_operand.vmem [shape: f32[1,64], index: 6, kind: input, shape index: {}]   ;;  %s2972_s7 = inlined_call_operand.vmem [shape: f32[64,32], index: 7, kind: input, shape index: {}]   ;;  %s2973_s8 = inlined_call_operand.vmem [shape: f32[1,32], index: 8, kind: input, shape index: {}]   ;;  %s2974_s9 = inlined_call_operand.vmem [shape: f32[1,32], index: 9, kind: input, shape index: {}]   ;;  %s2975_s10 = inlined_call_operand.vmem [shape: f32[1,32], index: 10, kind: input, shape index: {}]   ;;  %s2976_s11 = inlined_call_operand.hbm [shape: f32[16,32], index: 11, kind: output, shape index: {0}]   ;;  %s2977_s12 = inlined_call_operand.hbm [shape: f32[16,32], index: 12, kind: output, shape index: {1}]  }
   0x1   :  { %19 = vsyncpa [#allocation4], 0 }
   0x2   :  { %20 = vsyncpa [#allocation7], 0  ;;  %s2567_s21 = smov [#allocation2]   ;;  %s2495_s25 = scalar_lea.hbm %s2965_s0, 256 }
   0x3   :  { %s26_s22 = sshll.u32 %s2567_s21, 4  ;;  %p2496_p0 = scmp.ne.s32.totalorder %s2965_s0, %s2495_s25  ;;  %s27_s22 = int_to_ptr.vmem [resolvable:$true] %s26_s22 }
   0x4   :  { %p2499_p1 = scmp.lt.u32.totalorder %s2495_s25, %s2965_s0 }
   0x6   :  { %p2501_p2 = pnand %p2499_p1, %p2496_p0 }
   0x8   :  { %2504 = shalt.err (!%p2501_p2)
}
   0x9   :  { %s2505_s30 = scalar_lea.vmem %s27_s22, 256  ;;  %p2510_p4 = scmp.lt.s32.totalorder %s27_s22, %s27_s22 }
   0xa   :  { %p2506_p3 = scmp.ne.s32.totalorder %s27_s22, %s2505_s30  ;;  %p2511_p5 = scmp.lt.s32.totalorder %s2505_s30, %s2505_s30 }
   0xc   :  { %p2512_p6 = por %p2511_p5, %p2510_p4 }
   0xe   :  { %p2513_p7 = pnand %p2512_p6, %p2506_p3 }
  0x10   :  { %2516 = shalt.err (!%p2513_p7)
}
  0x11   :  { %s2568_s13 = smov 128   ;;  %s2569_s14 = smov 8  }
  0x12   :  { %32 = dma.hbm_to_vmem [thread:$0]  %s2965_s0, 256, %s27_s22, [#allocation3], %s2568_s13, %s2568_s13, %s2569_s14  }
  0x13   :  { %2561 = dma.done.wait [#allocation3], 256  }
  0x14   :  { %2562 = vsyncadd [#allocation3], 4294967040  ;;  %vm62_vm0 = vcmask 261120   ;;  %v58_v0 = vld [vmem:[%s2966_s1] sm:$0xff]  ;;  %v59_v1 = vld [vmem:[%s2966_s1 + $0x8] sm:$0xff]  ;;  %v2570_v8 = vmov 0.0  }
  0x15   :  { %v60_v2 = vld [vmem:[%s2966_s1 + $0x10] sm:$0xff]  ;;  %v2395_v3 = vpack.c.bf16 %v59_v1, %v58_v0  ;;  %v61_v4 = vld [vmem:[%s2966_s1 + $0x18] sm:$0xff]  ;;  %v2679_v5 = vld [vmem:[#allocation2] sm:$0xff]  ;;  %2275 = vmatprep.subr.mxu0 %v2570_v8  ;;  %vm2571_vm1 = vmmov 0   ;;  %s2572_s0 = smov 96   ;;  %vm147_vm2 = vcmask 64512  }
  0x16   :  { %v2399_v6 = vpack.c.bf16 %v61_v4, %v60_v2  ;;  %2262 = vmatprep.mubr.msk.f32.mxu1 %vm62_vm0, %v2679_v5  ;;  %v2683_v7 = vld [vmem:[#allocation2 + $0x8] sm:$0xff]  ;;  %2277 = vmatprep.mubr.msk.f32.mxu0 %vm2571_vm1, %v2570_v8  ;;  %s2573_s1 = smov 64   ;;  %s2574_s22 = smov 88   ;;  %v473_v30 = vld [vmem:[%s2967_s2] sm:$0xff]  ;;  %vm1981_vm3 = vcmask 523264   ;;  %vm1822_vm4 = vcmask 195584  }
  0x17   :  { %2396 = vmatprep.subr.bf16.mxu1 %v2395_v3  ;;  %s2575_s26 = smov 120   ;;  %s2576_s29 = smov 56   ;;  %vm1819_vm5 = vcmask 130048  }
  0x18   :  { %2398 = vmatpush3.bf16.msra.mxu1 %v2395_v3  ;;  %s2577_s30 = smov 112   ;;  %s2578_s15 = smov 80  }
  0x19   :  { %2400 = vmatprep.subr.bf16.mxu1 %v2399_v6  ;;  %s2579_s16 = smov 48   ;;  %s2580_s17 = smov 72  }
  0x1a   :  { %s2581_s18 = smov 104   ;;  %s2582_s24 = smov 40  }
  0x1c   :  { %2402 = vmatpush3.bf16.msra.mxu1 %v2399_v6 }
  0x1d   :  { %2265 = vmatprep.subr.mxu1 %v2570_v8 }
  0x1f   :  { %2263 = vmatmul.mubr.msk.f32.vlgmr.msra.gmra.mrb[0].mxu1 %vm62_vm0, %v2683_v7 }
  0x20   :  { %2267 = vmatprep.mubr.msk.f32.mxu1 %vm2571_vm1, %v2570_v8 }
  0xf2   :  { %v2693_v9 = vpop.f32.mrb[0].mxu1 }
  0xf3   :  { %v2695_v10 = vpop.f32.mrb[1].mxu1 }
  0xf4   :  { %145 = vrot.lane.b32.xlu0 %v2695_v10, %s2572_s0 }
  0xf8   :  { %223 = vrot.lane.b32.xlu0 %v2693_v9, %s2572_s0 }
 0x166   :  { %v146_v11 = vpop.permute.xlu0 %145 }
 0x167   :  { %2266 = vmatpush3.xpose.msk.msra.mxu1 %vm147_vm2, %v146_v11 }
 0x168   :  { %2270 = vmatprep.subr.mxu1 %v2570_v8 }
 0x16a   :  { %2268 = vmatmul.mubr.msk.f32.vlgmr.msra.gmra.mrb[2].mxu1 %vm147_vm2, %v2695_v10  ;;  %v224_v12 = vpop.permute.xlu0 %223 }
 0x16b   :  { %2271 = vmatpush3.xpose.msk.msra.mxu1 %vm147_vm2, %v224_v12  ;;  %2272 = vmatprep.mubr.msk.f32.mxu1 %vm2571_vm1, %v2570_v8 }
 0x16c   :  { %2280 = vmatprep.subr.mxu1 %v2570_v8 }
 0x16e   :  { %2273 = vmatmul.mubr.msk.f32.vlgmr.msra.gmra.mrb[4].mxu1 %vm147_vm2, %v2693_v9 }
 0x16f   :  { %2282 = vmatprep.mubr.msk.f32.mxu1 %vm2571_vm1, %v2570_v8 }
 0x23d   :  { %v218_v13 = vpop.f32.mrb[2].mxu1 }
 0x23e   :  { %v2269_v14 = vpop.f32.mrb[3].mxu1  ;;  %v299_v15 = vsel %vm147_vm2, %v218_v13, -inf }
 0x23f   :  { %300 = vmax.xlane.f32.xlu1 %v299_v15 }
 0x241   :  { %v295_v16 = vpop.f32.mrb[4].mxu1 }
 0x242   :  { %v2274_v17 = vpop.f32.mrb[5].mxu1  ;;  %v302_v18 = vsel %vm147_vm2, %v295_v16, -inf }
 0x243   :  { %303 = vmax.xlane.f32.xlu1 %v302_v18 }
 0x254   :  { %321 = vrot.lane.b32.xlu1 %v2695_v10, %s2573_s1 }
 0x2cc   :  { %v301_v19 = vpop.xlane.xlu1 %300 }
 0x2cd   :  { %v305_v20 = vsub.f32 %v218_v13, %v301_v19 }
 0x2cf   :  { %v307_v21 = vmul.f32 1.442695, %v305_v20 }
 0x2d0   :  { %v304_v22 = vpop.xlane.xlu1 %303 }
 0x2d1   :  { %2455 = vpow2.f32 %v307_v21  ;;  %v306_v23 = vsub.f32 %v295_v16, %v304_v22 }
 0x2d3   :  { %v309_v24 = vmul.f32 1.442695, %v306_v23 }
 0x2d4   :  { %v322_v25 = vpop.permute.xlu1 %321 }
 0x2d5   :  { %2457 = vpow2.f32 %v309_v24  ;;  %2276 = vmatpush3.msra.mxu0 %v322_v25  ;;  %v887_v24 = vld [vmem:[%s2967_s2 + $0x8] sm:$0xff] }
 0x2d6   :  { %2285 = vmatprep.subr.mxu0 %v473_v30 }
 0x2db   :  { %v2456_v26 = vpop.eup %2455 }
 0x2dc   :  { %v311_v27 = vsel %vm147_vm2, %v2456_v26, 0.0 }
 0x2dd   :  { %312 = vadd.xlane.f32.xlu0 %v311_v27 }
 0x2df   :  { %v2458_v28 = vpop.eup %2457 }
 0x2e0   :  { %v314_v29 = vsel %vm147_vm2, %v2458_v28, 0.0 }
 0x2e1   :  { %315 = vadd.xlane.f32.xlu1 %v314_v29 }
 0x2f2   :  { %397 = vrot.lane.b32.xlu1 %v2693_v9, %s2573_s1 }
 0x2f3   :  { %637 = vrot.lane.b32.xlu0 %v2693_v9, %s2574_s22 }
 0x2f6   :  { %559 = vrot.lane.b32.xlu1 %v2695_v10, %s2574_s22 }
 0x2fa   :  { %557 = vrot.lane.b32.xlu1 %v2695_v10, %s2575_s26 }
 0x2fe   :  { %635 = vrot.lane.b32.xlu1 %v2693_v9, %s2575_s26 }
 0x36a   :  { %v313_v31 = vpop.xlane.xlu0 %312 }
 0x36b   :  { %2459 = vrcp.f32 %v313_v31 }
 0x36e   :  { %v316_v32 = vpop.xlane.xlu1 %315  ;;  %v638_v43 = vpop.permute.xlu0 %637 }
 0x36f   :  { %2461 = vrcp.f32 %v316_v32 }
 0x372   :  { %v398_v33 = vpop.permute.xlu1 %397 }
 0x373   :  { %2281 = vmatpush3.msra.mxu1 %v398_v33 }
 0x374   :  { %2290 = vmatprep.subr.mxu1 %v2570_v8 }
 0x375   :  { %v2460_v34 = vpop.eup %2459 }
 0x376   :  { %v2725_v35 = vmul.f32 %v2460_v34, %v2456_v26  ;;  %v560_v37 = vpop.permute.xlu1 %559 }
 0x378   :  { %2278 = vmatmul.mubr.msk.f32.vlgmr.msra.gmra.mrb[0].mxu0 %vm147_vm2, %v2725_v35 }
 0x379   :  { %v2462_v36 = vpop.eup %2461  ;;  %2286 = vmatpush3.msra.mxu0 %v473_v30 }
 0x37a   :  { %v2729_v38 = vmul.f32 %v2462_v36, %v2458_v28  ;;  %2295 = vmatprep.subr.mxu0 %v2570_v8  ;;  %v558_v39 = vpop.permute.xlu1 %557 }
 0x37c   :  { %2283 = vmatmul.mubr.msk.f32.vlgmr.msra.gmra.mrb[6].mxu1 %vm147_vm2, %v2729_v38 }
 0x37d   :  { %2291 = vmatpush3.xpose.msk.msra.mxu1 %vm147_vm2, %v560_v37  ;;  %2292 = vmatprep.mubr.msk.f32.mxu1 %vm2571_vm1, %v2570_v8 }
 0x37e   :  { %2300 = vmatprep.subr.mxu1 %v2570_v8  ;;  %v636_v45 = vpop.permute.xlu1 %635 }
 0x380   :  { %2293 = vmatmul.mubr.msk.f32.vlgmr.msra.gmra.mrb[8].mxu1 %vm147_vm2, %v558_v39 }
 0x381   :  { %2302 = vmatprep.mubr.msk.f32.mxu1 %vm2571_vm1, %v2570_v8 }
 0x44b   :  { %v393_v40 = vpop.f32.mrb[0].mxu0 }
 0x44c   :  { %v2279_v41 = vpop.f32.mrb[1].mxu0  ;;  %2287 = vmatprep.mubr.msk.f32.mxu0 %vm147_vm2, %v393_v40 }
 0x44d   :  { %v1301_v41 = vld [vmem:[%s2967_s2 + $0x10] sm:$0xff] }
 0x44f   :  { %v469_v42 = vpop.f32.mrb[6].mxu1 }
 0x450   :  { %v2284_v44 = vpop.f32.mrb[7].mxu1  ;;  %2288 = vmatmul.mubr.msk.f32.vlgmr.msra.gmra.mrb[2].mxu0 %vm147_vm2, %v469_v42 }
 0x451   :  { %2296 = vmatpush3.xpose.msk.msra.mxu0 %vm147_vm2, %v638_v43  ;;  %2297 = vmatprep.mubr.msk.f32.mxu0 %vm2571_vm1, %v2570_v8 }
 0x452   :  { %2305 = vmatprep.subr.mxu0 %v2570_v8 }
 0x453   :  { %v631_v46 = vpop.f32.mrb[8].mxu1 }
 0x454   :  { %v2294_v47 = vpop.f32.mrb[9].mxu1  ;;  %2298 = vmatmul.mubr.msk.f32.vlgmr.msra.gmra.mrb[4].mxu0 %vm147_vm2, %v636_v45  ;;  %v713_v48 = vsel %vm147_vm2, %v631_v46, -inf }
 0x455   :  { %714 = vmax.xlane.f32.xlu1 %v713_v48  ;;  %2307 = vmatprep.mubr.msk.f32.mxu0 %vm2571_vm1, %v2570_v8 }
 0x466   :  { %735 = vrot.lane.b32.xlu1 %v2695_v10, %s2576_s29 }
 0x46a   :  { %971 = vrot.lane.b32.xlu1 %v2695_v10, %s2577_s30 }
 0x46e   :  { %1051 = vrot.lane.b32.xlu1 %v2693_v9, %s2578_s15 }
 0x472   :  { %1049 = vrot.lane.b32.xlu1 %v2693_v9, %s2577_s30 }
 0x4e2   :  { %v715_v49 = vpop.xlane.xlu1 %714 }
 0x4e3   :  { %v719_v50 = vsub.f32 %v631_v46, %v715_v49 }
 0x4e5   :  { %v721_v51 = vmul.f32 1.442695, %v719_v50 }
 0x4e6   :  { %v736_v52 = vpop.permute.xlu1 %735 }
 0x4e7   :  { %2463 = vpow2.f32 %v721_v51  ;;  %2301 = vmatpush3.msra.mxu1 %v736_v52 }
 0x4e8   :  { %2315 = vmatprep.subr.mxu1 %v2570_v8 }
 0x4ea   :  { %v972_v59 = vpop.permute.xlu1 %971 }
 0x4ee   :  { %v1052_v63 = vpop.permute.xlu1 %1051 }
 0x4f1   :  { %v2464_v53 = vpop.eup %2463 }
 0x4f2   :  { %v725_v54 = vsel %vm147_vm2, %v2464_v53, 0.0  ;;  %v1050_v0 = vpop.permute.xlu1 %1049 }
 0x4f3   :  { %726 = vadd.xlane.f32.xlu0 %v725_v54 }
 0x509   :  { %973 = vrot.lane.b32.xlu0 %v2695_v10, %s2578_s15 }
 0x527   :  { %v709_v55 = vpop.f32.mrb[4].mxu0 }
 0x528   :  { %v2299_v56 = vpop.f32.mrb[5].mxu0  ;;  %v716_v57 = vsel %vm147_vm2, %v709_v55, -inf }
 0x529   :  { %717 = vmax.xlane.f32.xlu1 %v716_v57 }
 0x580   :  { %v727_v58 = vpop.xlane.xlu0 %726 }
 0x581   :  { %2465 = vrcp.f32 %v727_v58 }
 0x584   :  { %v974_v62 = vpop.permute.xlu0 %973 }
 0x58b   :  { %v2466_v60 = vpop.eup %2465 }
 0x58c   :  { %v2760_v61 = vmul.f32 %v2466_v60, %v2464_v53 }
 0x58e   :  { %2303 = vmatmul.mubr.msk.f32.vlgmr.msra.gmra.mrb[10].mxu1 %vm147_vm2, %v2760_v61 }
 0x58f   :  { %2316 = vmatpush3.xpose.msk.msra.mxu1 %vm147_vm2, %v974_v62  ;;  %2317 = vmatprep.mubr.msk.f32.mxu1 %vm2571_vm1, %v2570_v8 }
 0x590   :  { %2320 = vmatprep.subr.mxu1 %v2570_v8 }
 0x592   :  { %2318 = vmatmul.mubr.msk.f32.vlgmr.msra.gmra.mrb[12].mxu1 %vm147_vm2, %v972_v59 }
 0x593   :  { %2321 = vmatpush3.xpose.msk.msra.mxu1 %vm147_vm2, %v1052_v63  ;;  %2322 = vmatprep.mubr.msk.f32.mxu1 %vm2571_vm1, %v2570_v8 }
 0x594   :  { %2330 = vmatprep.subr.mxu1 %v2570_v8 }
 0x596   :  { %2323 = vmatmul.mubr.msk.f32.vlgmr.msra.gmra.mrb[14].mxu1 %vm147_vm2, %v1050_v0 }
 0x597   :  { %2332 = vmatprep.mubr.msk.f32.mxu1 %vm2571_vm1, %v2570_v8 }
 0x5b6   :  { %v718_v1 = vpop.xlane.xlu1 %717 }
 0x5b7   :  { %v720_v2 = vsub.f32 %v709_v55, %v718_v1 }
 0x5b9   :  { %v723_v3 = vmul.f32 1.442695, %v720_v2 }
 0x5bb   :  { %2467 = vpow2.f32 %v723_v3 }
 0x5c5   :  { %v2468_v4 = vpop.eup %2467 }
 0x5c6   :  { %v728_v6 = vsel %vm147_vm2, %v2468_v4, 0.0 }
 0x5c7   :  { %729 = vadd.xlane.f32.xlu0 %v728_v6 }
 0x5dd   :  { %811 = vrot.lane.b32.xlu0 %v2693_v9, %s2576_s29 }
 0x5e1   :  { %1225 = vrot.lane.b32.xlu0 %v2693_v9, %s2579_s16 }
 0x5e5   :  { %1387 = vrot.lane.b32.xlu0 %v2695_v10, %s2580_s17 }
 0x5e9   :  { %1465 = vrot.lane.b32.xlu0 %v2693_v9, %s2580_s17 }
 0x5ed   :  { %1385 = vrot.lane.b32.xlu0 %v2695_v10, %s2581_s18 }
 0x654   :  { %v730_v11 = vpop.xlane.xlu0 %729 }
 0x655   :  { %2469 = vrcp.f32 %v730_v11 }
 0x658   :  { %v812_v12 = vpop.permute.xlu0 %811 }
 0x659   :  { %2306 = vmatpush3.msra.mxu0 %v812_v12 }
 0x65a   :  { %2310 = vmatprep.subr.mxu0 %v887_v24 }
 0x65c   :  { %v1226_v13 = vpop.permute.xlu0 %1225 }
 0x65d   :  { %2331 = vmatpush3.msra.mxu1 %v1226_v13 }
 0x65e   :  { %2340 = vmatprep.subr.mxu1 %v2570_v8 }
 0x65f   :  { %v2470_v14 = vpop.eup %2469 }
 0x660   :  { %v2786_v15 = vmul.f32 %v2470_v14, %v2468_v4  ;;  %v1388_v43 = vpop.permute.xlu0 %1387 }
 0x661   :  { %v807_v16 = vpop.f32.mrb[10].mxu1 }
 0x662   :  { %v2304_v17 = vpop.f32.mrb[11].mxu1  ;;  %2308 = vmatmul.mubr.msk.f32.vlgmr.msra.gmra.mrb[6].mxu0 %vm147_vm2, %v2786_v15 }
 0x663   :  { %2312 = vmatprep.mubr.msk.f32.mxu0 %vm147_vm2, %v807_v16  ;;  %2311 = vmatpush3.msra.mxu0 %v887_v24  ;;  %v1715_v17 = vld [vmem:[%s2967_s2 + $0x18] sm:$0xff] }
 0x664   :  { %2325 = vmatprep.subr.mxu0 %v2570_v8  ;;  %v1466_v47 = vpop.permute.xlu0 %1465 }
 0x665   :  { %v1045_v18 = vpop.f32.mrb[12].mxu1 }
 0x666   :  { %v2319_v19 = vpop.f32.mrb[13].mxu1  ;;  %v1127_v20 = vsel %vm147_vm2, %v1045_v18, -inf }
 0x667   :  { %1128 = vmax.xlane.f32.xlu1 %v1127_v20 }
 0x668   :  { %v1386_v49 = vpop.permute.xlu0 %1385 }
 0x669   :  { %v1123_v21 = vpop.f32.mrb[14].mxu1 }
 0x66a   :  { %v2324_v22 = vpop.f32.mrb[15].mxu1  ;;  %v1130_v23 = vsel %vm147_vm2, %v1123_v21, -inf }
 0x66b   :  { %1131 = vmax.xlane.f32.xlu1 %v1130_v23 }
 0x6f4   :  { %v1129_v25 = vpop.xlane.xlu1 %1128 }
 0x6f5   :  { %v1133_v26 = vsub.f32 %v1045_v18, %v1129_v25 }
 0x6f7   :  { %v1135_v27 = vmul.f32 1.442695, %v1133_v26 }
 0x6f8   :  { %v1132_v28 = vpop.xlane.xlu1 %1131 }
 0x6f9   :  { %2471 = vpow2.f32 %v1135_v27  ;;  %v1134_v29 = vsub.f32 %v1123_v21, %v1132_v28 }
 0x6fb   :  { %v1137_v30 = vmul.f32 1.442695, %v1134_v29 }
 0x6fd   :  { %2473 = vpow2.f32 %v1137_v30 }
 0x703   :  { %v2472_v31 = vpop.eup %2471 }
 0x704   :  { %v1139_v32 = vsel %vm147_vm2, %v2472_v31, 0.0 }
 0x705   :  { %1140 = vadd.xlane.f32.xlu1 %v1139_v32 }
 0x707   :  { %v2474_v33 = vpop.eup %2473 }
 0x708   :  { %v1142_v34 = vsel %vm147_vm2, %v2474_v33, 0.0 }
 0x709   :  { %1143 = vadd.xlane.f32.xlu1 %v1142_v34 }
 0x71a   :  { %1149 = vrot.lane.b32.xlu1 %v2695_v10, %s2579_s16 }
 0x71e   :  { %1463 = vrot.lane.b32.xlu1 %v2693_v9, %s2581_s18 }
 0x735   :  { %v883_v36 = vpop.f32.mrb[6].mxu0 }
 0x736   :  { %v2309_v37 = vpop.f32.mrb[7].mxu0  ;;  %2313 = vmatmul.mubr.msk.f32.vlgmr.msra.gmra.mrb[2].mxu0 %vm147_vm2, %v883_v36 }
 0x737   :  { %2327 = vmatprep.mubr.msk.f32.mxu0 %vm2571_vm1, %v2570_v8 }
 0x792   :  { %v1141_v39 = vpop.xlane.xlu1 %1140 }
 0x793   :  { %2475 = vrcp.f32 %v1141_v39 }
 0x796   :  { %v1144_v40 = vpop.xlane.xlu1 %1143 }
 0x797   :  { %2477 = vrcp.f32 %v1144_v40 }
 0x79a   :  { %v1150_v42 = vpop.permute.xlu1 %1149 }
 0x79b   :  { %2326 = vmatpush3.msra.mxu0 %v1150_v42 }
 0x79c   :  { %2335 = vmatprep.subr.mxu0 %v1301_v41 }
 0x79d   :  { %v2476_v44 = vpop.eup %2475 }
 0x79e   :  { %v2809_v45 = vmul.f32 %v2476_v44, %v2472_v31  ;;  %v1464_v54 = vpop.permute.xlu1 %1463  ;;  %v1875_v44 = vld [vmem:[%s2970_s5 + $0x18] sm:$0xff] }
 0x7a0   :  { %2328 = vmatmul.mubr.msk.f32.vlgmr.msra.gmra.mrb[8].mxu0 %vm147_vm2, %v2809_v45 }
 0x7a1   :  { %v2478_v46 = vpop.eup %2477  ;;  %2336 = vmatpush3.msra.mxu0 %v1301_v41  ;;  %v1873_v41 = vld [vmem:[%s2970_s5 + $0x8] sm:$0xff] }
 0x7a2   :  { %v2813_v48 = vmul.f32 %v2478_v46, %v2474_v33  ;;  %2345 = vmatprep.subr.mxu0 %v2570_v8 }
 0x7a4   :  { %2333 = vmatmul.mubr.msk.f32.vlgmr.msra.gmra.mrb[16].mxu1 %vm147_vm2, %v2813_v48 }
 0x7a5   :  { %2341 = vmatpush3.xpose.msk.msra.mxu1 %vm147_vm2, %v1388_v43  ;;  %2342 = vmatprep.mubr.msk.f32.mxu1 %vm2571_vm1, %v2570_v8  ;;  %v1874_v43 = vld [vmem:[%s2970_s5 + $0x10] sm:$0xff] }
 0x7a6   :  { %2350 = vmatprep.subr.mxu1 %v2570_v8  ;;  %v2407_v46 = vpack.c.bf16 %v1875_v44, %v1874_v43 }
 0x7a8   :  { %2343 = vmatmul.mubr.msk.f32.vlgmr.msra.gmra.mrb[18].mxu1 %vm147_vm2, %v1386_v49  ;;  %v1967_v49 = vld [vmem:[%s2972_s7 + $0x8] sm:$0xff] }
 0x7a9   :  { %2352 = vmatprep.mubr.msk.f32.mxu1 %vm2571_vm1, %v2570_v8 }
 0x873   :  { %v1221_v50 = vpop.f32.mrb[8].mxu0 }
 0x874   :  { %v2329_v51 = vpop.f32.mrb[9].mxu0  ;;  %2337 = vmatprep.mubr.msk.f32.mxu0 %vm147_vm2, %v1221_v50  ;;  %v1968_v50 = vld [vmem:[%s2972_s7 + $0x10] sm:$0xff] }
 0x877   :  { %v1297_v52 = vpop.f32.mrb[16].mxu1 }
 0x878   :  { %v2334_v53 = vpop.f32.mrb[17].mxu1  ;;  %2338 = vmatmul.mubr.msk.f32.vlgmr.msra.gmra.mrb[2].mxu0 %vm147_vm2, %v1297_v52  ;;  %v1969_v52 = vld [vmem:[%s2972_s7 + $0x18] sm:$0xff] }
 0x879   :  { %2346 = vmatpush3.xpose.msk.msra.mxu0 %vm147_vm2, %v1466_v47  ;;  %2347 = vmatprep.mubr.msk.f32.mxu0 %vm2571_vm1, %v2570_v8  ;;  %v1966_v47 = vld [vmem:[%s2972_s7] sm:$0xff]  ;;  %v2415_v53 = vpack.c.bf16 %v1969_v52, %v1968_v50 }
 0x87a   :  { %2355 = vmatprep.subr.mxu0 %v2570_v8  ;;  %v2411_v51 = vpack.c.bf16 %v1967_v49, %v1966_v47 }
 0x87b   :  { %v1459_v55 = vpop.f32.mrb[18].mxu1 }
 0x87c   :  { %v2344_v56 = vpop.f32.mrb[19].mxu1  ;;  %2348 = vmatmul.mubr.msk.f32.vlgmr.msra.gmra.mrb[10].mxu0 %vm147_vm2, %v1464_v54  ;;  %v1541_v57 = vsel %vm147_vm2, %v1459_v55, -inf  ;;  %v1970_v54 = vld [vmem:[%s2972_s7 + $0x20] sm:$0xff] }
 0x87d   :  { %1542 = vmax.xlane.f32.xlu0 %v1541_v57  ;;  %2357 = vmatprep.mubr.msk.f32.mxu0 %vm2571_vm1, %v2570_v8 }
 0x90a   :  { %v1543_v58 = vpop.xlane.xlu0 %1542 }
 0x90b   :  { %v1547_v59 = vsub.f32 %v1459_v55, %v1543_v58  ;;  %v1971_v55 = vld [vmem:[%s2972_s7 + $0x28] sm:$0xff] }
 0x90c   :  { %v2419_v56 = vpack.c.bf16 %v1971_v55, %v1970_v54 }
 0x90d   :  { %v1549_v60 = vmul.f32 1.442695, %v1547_v59 }
 0x90f   :  { %2479 = vpow2.f32 %v1549_v60 }
 0x919   :  { %v2480_v62 = vpop.eup %2479 }
 0x91a   :  { %v1553_v63 = vsel %vm147_vm2, %v2480_v62, 0.0 }
 0x91b   :  { %1554 = vadd.xlane.f32.xlu0 %v1553_v63 }
 0x94f   :  { %v1537_v0 = vpop.f32.mrb[10].mxu0 }
 0x950   :  { %v2349_v1 = vpop.f32.mrb[11].mxu0  ;;  %v1544_v2 = vsel %vm147_vm2, %v1537_v0, -inf }
 0x951   :  { %1545 = vmax.xlane.f32.xlu1 %v1544_v2  ;;  %v2178_v1 = vld [vmem:[%s2968_s3] ss:$0 sm:$0xff] }
 0x962   :  { %1563 = vrot.lane.b32.xlu1 %v2695_v10, %s2582_s24 }
 0x9a8   :  { %v1555_v3 = vpop.xlane.xlu0 %1554 }
 0x9a9   :  { %2481 = vrcp.f32 %v1555_v3 }
 0x9b3   :  { %v2482_v8 = vpop.eup %2481 }
 0x9b4   :  { %v2838_v12 = vmul.f32 %v2482_v8, %v2480_v62 }
 0x9de   :  { %v1546_v4 = vpop.xlane.xlu1 %1545 }
 0x9df   :  { %v1548_v6 = vsub.f32 %v1537_v0, %v1546_v4 }
 0x9e1   :  { %v1551_v11 = vmul.f32 1.442695, %v1548_v6  ;;  %v2179_v6 = vld [vmem:[%s2969_s4] ss:$0 sm:$0xff] }
 0x9e2   :  { %v1564_v13 = vpop.permute.xlu1 %1563 }
 0x9e3   :  { %2483 = vpow2.f32 %v1551_v11  ;;  %2351 = vmatpush3.msra.mxu1 %v1564_v13 }
 0x9e4   :  { %2353 = vmatmul.mubr.msk.f32.vlgmr.msra.gmra.mrb[20].mxu1 %vm147_vm2, %v2838_v12 }
 0x9ed   :  { %v2484_v14 = vpop.eup %2483 }
 0x9ee   :  { %v1556_v16 = vsel %vm147_vm2, %v2484_v14, 0.0 }
 0x9ef   :  { %1557 = vadd.xlane.f32.xlu0 %v1556_v16  ;;  %v1972_v16 = vld [vmem:[%s2972_s7 + $0x30] sm:$0xff] }
 0xa05   :  { %1639 = vrot.lane.b32.xlu0 %v2693_v9, %s2582_s24 }
 0xa7c   :  { %v1558_v10 = vpop.xlane.xlu0 %1557 }
 0xa7d   :  { %2485 = vrcp.f32 %v1558_v10  ;;  %v1973_v10 = vld [vmem:[%s2972_s7 + $0x38] sm:$0xff]  ;;  %s2584_s7 = smov 24  }
 0xa80   :  { %v1640_v18 = vpop.permute.xlu0 %1639 }
 0xa81   :  { %2356 = vmatpush3.msra.mxu0 %v1640_v18  ;;  %v2180_v18 = vld [vmem:[%s2971_s6] ss:$0 sm:$0xff]  ;;  %s2583_s6 = smov 16  }
 0xa82   :  { %2360 = vmatprep.subr.mxu0 %v1715_v17 }
 0xa87   :  { %v2486_v19 = vpop.eup %2485 }
 0xa88   :  { %v2847_v20 = vmul.f32 %v2486_v19, %v2484_v14 }
 0xa8a   :  { %2358 = vmatmul.mubr.msk.f32.vlgmr.msra.gmra.mrb[12].mxu0 %vm147_vm2, %v2847_v20 }
 0xa8b   :  { %2361 = vmatpush3.msra.mxu0 %v1715_v17  ;;  %v2423_v17 = vpack.c.bf16 %v1973_v10, %v1972_v16 }
 0xa8c   :  { %2412 = vmatprep.subr.bf16.mxu0 %v2411_v51 }
 0xab7   :  { %v1635_v21 = vpop.f32.mrb[20].mxu1 }
 0xab8   :  { %v2354_v22 = vpop.f32.mrb[21].mxu1  ;;  %2362 = vmatprep.mubr.msk.f32.mxu0 %vm147_vm2, %v1635_v21 }
 0xb5d   :  { %v1711_v9 = vpop.f32.mrb[12].mxu0 }
 0xb5e   :  { %v2359_v23 = vpop.f32.mrb[13].mxu0  ;;  %2363 = vmatmul.mubr.msk.f32.vlgmr.msra.gmra.mrb[2].mxu0 %vm147_vm2, %v1711_v9 }
 0xb5f   :  { %2414 = vmatpush3.bf16.msra.mxu0 %v2411_v51 }
 0xb60   :  { %2416 = vmatprep.subr.bf16.mxu0 %v2415_v53 }
 0xb63   :  { %2418 = vmatpush3.bf16.msra.mxu0 %v2415_v53 }
 0xb64   :  { %2420 = vmatprep.subr.bf16.mxu0 %v2419_v56 }
 0xb67   :  { %2422 = vmatpush3.bf16.msra.mxu0 %v2419_v56 }
 0xb68   :  { %2424 = vmatprep.subr.bf16.mxu0 %v2423_v17 }
 0xb6b   :  { %2426 = vmatpush3.bf16.msra.mxu0 %v2423_v17 }
 0xc31   :  { %v2364_v24 = vpop.f32.mrb[2].mxu0 }
 0xc32   :  { %v2427_v25 = vadd.f32 %v2364_v24, %v2683_v7  ;;  %v1788_v26 = vpop.f32.mrb[3].mxu0 }
 0xc33   :  { %v2428_v27 = vadd.f32 %v1788_v26, %v2679_v5  ;;  %v1872_v5 = vld [vmem:[%s2970_s5] sm:$0xff] }
 0xc34   :  { %v1830_v28 = vsel %vm62_vm0, %v2427_v25, 0.0  ;;  %v2403_v42 = vpack.c.bf16 %v1873_v41, %v1872_v5 }
 0xc35   :  { %1831 = vadd.xlane.f32.xlu0 %v1830_v28  ;;  %v1827_v29 = vsel %vm62_vm0, %v2428_v27, 0.0 }
 0xc36   :  { %1828 = vadd.xlane.f32.xlu1 %v1827_v29  ;;  %2404 = vmatprep.subr.bf16.mxu1 %v2403_v42 }
 0xc37   :  { %2406 = vmatpush3.bf16.msra.mxu1 %v2403_v42 }
 0xc38   :  { %2408 = vmatprep.subr.bf16.mxu1 %v2407_v46 }
 0xc3b   :  { %2410 = vmatpush3.bf16.msra.mxu1 %v2407_v46 }
 0xcc2   :  { %v1832_v30 = vpop.xlane.xlu0 %1831 }
 0xcc3   :  { %v1835_v31 = vmul.f32 0.03125, %v1832_v30  ;;  %v1829_v32 = vpop.xlane.xlu1 %1828 }
 0xcc4   :  { %v1834_v33 = vmul.f32 0.03125, %v1829_v32 }
 0xcc5   :  { %v1837_v34 = vsub.f32 %v2427_v25, %v1835_v31  ;;  %v2183_v25 = vld [vmem:[%s2973_s8] ss:$0 sm:$0xff]  ;;  %s2585_s8 = smov [#allocation6]  }
 0xcc6   :  { %v1836_v36 = vsub.f32 %v2428_v27, %v1834_v33  ;;  %s2128_s17 = sshll.u32 %s2585_s8, 4  ;;  %s2129_s17 = int_to_ptr.vmem [resolvable:$true] %s2128_s17 }
 0xcc7   :  { %v1839_v37 = vmul.f32 %v1837_v34, %v1837_v34  ;;  %s2517_s18 = scalar_lea.vmem %s2129_s17, 256  ;;  %p2522_p9 = scmp.lt.s32.totalorder %s2129_s17, %s2129_s17 }
 0xcc8   :  { %v1838_v39 = vmul.f32 %v1836_v36, %v1836_v36  ;;  %p2518_p8 = scmp.ne.s32.totalorder %s2129_s17, %s2517_s18  ;;  %p2523_p10 = scmp.lt.s32.totalorder %s2517_s18, %s2517_s18 }
 0xcc9   :  { %v1843_v40 = vsel %vm62_vm0, %v1839_v37, 0.0 }
 0xcca   :  { %1844 = vadd.xlane.f32.xlu0 %v1843_v40  ;;  %v1840_v7 = vsel %vm62_vm0, %v1838_v39, 0.0  ;;  %p2524_p11 = por %p2523_p10, %p2522_p9 }
 0xccb   :  { %1841 = vadd.xlane.f32.xlu1 %v1840_v7 }
 0xccc   :  { %p2525_p12 = pnand %p2524_p11, %p2518_p8 }
 0xd57   :  { %v1845_v57 = vpop.xlane.xlu0 %1844 }
 0xd58   :  { %v1847_v58 = vmul.f32 0.03125, %v1845_v57  ;;  %v1842_v59 = vpop.xlane.xlu1 %1841 }
 0xd59   :  { %v1846_v60 = vmul.f32 0.03125, %v1842_v59 }
 0xd5a   :  { %v1849_v62 = vadd.f32 1e-06, %v1847_v58 }
 0xd5b   :  { %v1848_v63 = vadd.f32 1e-06, %v1846_v60 }
 0xd5c   :  { %2487 = vrsqrt.f32 %v1849_v62 }
 0xd5d   :  { %2489 = vrsqrt.f32 %v1848_v63 }
 0xd66   :  { %v2488_v0 = vpop.eup %2487 }
 0xd67   :  { %v2490_v2 = vpop.eup %2489  ;;  %v1853_v3 = vmul.f32 %v2488_v0, %v1837_v34 }
 0xd68   :  { %v1852_v4 = vmul.f32 %v2490_v2, %v1836_v36 }
 0xd69   :  { %v1862_v8 = vmul.f32 %v2178_v1, %v1853_v3 }
 0xd6a   :  { %v1861_v11 = vmul.f32 %v2178_v1, %v1852_v4 }
 0xd6b   :  { %v1871_v14 = vadd.f32 %v2179_v6, %v1862_v8 }
 0xd6c   :  { %v1870_v13 = vadd.f32 %v2179_v6, %v1861_v11 }
 0xd6e   :  { %2373 = vmatprep.mubr.msk.f32.mxu1 %vm62_vm0, %v1870_v13 }
 0xd6f   :  { %2374 = vmatmul.mubr.msk.f32.vlgmr.msra.gmra.mrb[22].mxu1 %vm62_vm0, %v1871_v14 }
 0xe42   :  { %v2375_v19 = vpop.f32.mrb[22].mxu1 }
 0xe43   :  { %v1961_v21 = vadd.f32 %v2375_v19, %v2180_v18  ;;  %v1955_v22 = vpop.f32.mrb[23].mxu1 }
 0xe44   :  { %v1956_v9 = vadd.f32 %v2180_v18, %v1955_v22 }
 0xe45   :  { %v1965_v24 = vmax.f32 %v1961_v21, 0.0 }
 0xe46   :  { %v1964_v23 = vmax.f32 %v1956_v9, 0.0 }
 0xe48   :  { %2392 = vmatprep.mubr.msk.f32.mxu0 %vm1981_vm3, %v1964_v23 }
 0xe49   :  { %2393 = vmatmul.mubr.msk.f32.vlgmr.msra.gmra.mrb[14].mxu0 %vm1981_vm3, %v1965_v24 }
 0xf1c   :  { %v2394_v26 = vpop.f32.mrb[14].mxu0 }
 0xf1d   :  { %v2060_v27 = vadd.f32 %v2394_v26, %v2183_v25  ;;  %v2054_v28 = vpop.f32.mrb[15].mxu0 }
 0xf1e   :  { %v2055_v29 = vadd.f32 %v2183_v25, %v2054_v28 }
 0xf1f   :  { %v2064_v30 = vadd.f32 %v2060_v27, %v1871_v14 }
 0xf20   :  { %v2063_v31 = vadd.f32 %v2055_v29, %v1870_v13 }
 0xf21   :  { %v2068_v32 = vsel %vm62_vm0, %v2064_v30, 0.0 }
 0xf22   :  { %2069 = vadd.xlane.f32.xlu0 %v2068_v32  ;;  %v2065_v33 = vsel %vm62_vm0, %v2063_v31, 0.0 }
 0xf23   :  { %2066 = vadd.xlane.f32.xlu1 %v2065_v33 }
 0xf34   :  { %1799 = vrot.lane.b32.xlu1 %v2760_v61, %s2569_s14 }
 0xf38   :  { %1805 = vrot.lane.b32.xlu1 %v2809_v45, %s2583_s6 }
 0xf3c   :  { %1807 = vrot.lane.b32.xlu1 %v2813_v48, %s2583_s6 }
 0xfaf   :  { %v2070_v34 = vpop.xlane.xlu0 %2069 }
 0xfb0   :  { %v2072_v36 = vmul.f32 0.03125, %v2070_v34  ;;  %v2067_v37 = vpop.xlane.xlu1 %2066 }
 0xfb1   :  { %v2071_v39 = vmul.f32 0.03125, %v2067_v37 }
 0xfb2   :  { %v2074_v40 = vsub.f32 %v2064_v30, %v2072_v36 }
 0xfb3   :  { %v2073_v7 = vsub.f32 %v2063_v31, %v2071_v39 }
 0xfb4   :  { %v2076_v5 = vmul.f32 %v2074_v40, %v2074_v40  ;;  %v1800_v61 = vpop.permute.xlu1 %1799 }
 0xfb5   :  { %v2075_v41 = vmul.f32 %v2073_v7, %v2073_v7 }
 0xfb6   :  { %v2080_v42 = vsel %vm62_vm0, %v2076_v5, 0.0 }
 0xfb7   :  { %2081 = vadd.xlane.f32.xlu0 %v2080_v42  ;;  %v2077_v43 = vsel %vm62_vm0, %v2075_v41, 0.0 }
 0xfb8   :  { %2078 = vadd.xlane.f32.xlu1 %v2077_v43  ;;  %v1806_v45 = vpop.permute.xlu1 %1805 }
 0xfbc   :  { %v1808_v48 = vpop.permute.xlu1 %1807 }
 0xfc9   :  { %1813 = vrot.lane.b32.xlu1 %v2847_v20, %s2584_s7 }
 0xfcd   :  { %1801 = vrot.lane.b32.xlu0 %v2786_v15, %s2569_s14 }
 0xfd1   :  { %1811 = vrot.lane.b32.xlu0 %v2838_v12, %s2584_s7  ;;  %v1817_v12 = vsel %vm147_vm2, %v2725_v35, %v1800_v61 }
 0xfd2   :  { %v1820_v55 = vsel %vm1819_vm5, %v1817_v12, %v1806_v45 }
0x1044   :  { %v2082_v44 = vpop.xlane.xlu0 %2081 }
0x1045   :  { %v2084_v46 = vmul.f32 0.03125, %v2082_v44  ;;  %v2079_v47 = vpop.xlane.xlu1 %2078 }
0x1046   :  { %v2083_v49 = vmul.f32 0.03125, %v2079_v47 }
0x1047   :  { %v2086_v50 = vadd.f32 1e-06, %v2084_v46 }
0x1048   :  { %v2085_v51 = vadd.f32 1e-06, %v2083_v49  ;;  %v1802_v52 = vpop.permute.xlu0 %1801 }
0x1049   :  { %2491 = vrsqrt.f32 %v2086_v50  ;;  %v1818_v20 = vsel %vm147_vm2, %v2729_v38, %v1802_v52  ;;  %v1814_v53 = vpop.permute.xlu1 %1813 }
0x104a   :  { %2493 = vrsqrt.f32 %v2085_v51  ;;  %v1821_v15 = vsel %vm1819_vm5, %v1818_v20, %v1808_v48 }
0x104b   :  { %v1824_v54 = vsel %vm1822_vm4, %v1821_v15, %v1814_v53 }
0x104c   :  { %1826 = vst.msk [vmem:[#allocation6 + $0x8] sm:$0xff] %vm62_vm0, %v1824_v54  ;;  %v1812_v56 = vpop.permute.xlu0 %1811 }
0x104d   :  { %v1823_v57 = vsel %vm1822_vm4, %v1820_v55, %v1812_v56 }
0x104e   :  { %1825 = vst.msk [vmem:[#allocation6] sm:$0xff] %vm62_vm0, %v1823_v57 }
0x104f   :  { %2528 = shalt.err (!%p2525_p12)
}
0x1050   :  { %s2529_s21 = scalar_lea.hbm %s2977_s12, 256 }
0x1051   :  { %p2530_p13 = scmp.ne.s32.totalorder %s2977_s12, %s2529_s21  ;;  %p2533_p0 = scmp.lt.u32.totalorder %s2529_s21, %s2977_s12 }
0x1053   :  { %p2535_p1 = pnand %p2533_p0, %p2530_p13 }
0x1055   :  { %2538 = shalt.err (!%p2535_p1)
}
0x1056   :  { %2134 = dma.vmem_to_hbm [thread:$0]  %s2129_s17, 256, %s2977_s12, [#allocation7], %s2568_s13, %s2568_s13, %s2569_s14   ;;  %v2492_v35 = vpop.eup %2491 }
0x1057   :  { %v2186_v38 = vld [vmem:[%s2974_s9] ss:$0 sm:$0xff]  ;;  %v2494_v58 = vpop.eup %2493  ;;  %v2090_v59 = vmul.f32 %v2492_v35, %v2074_v40  ;;  %s2586_s28 = smov [#allocation5]  }
0x1058   :  { %v2089_v60 = vmul.f32 %v2494_v58, %v2073_v7  ;;  %v2187_v62 = vld [vmem:[%s2975_s10] ss:$0 sm:$0xff]  ;;  %s2116_s3 = sshll.u32 %s2586_s28, 4  ;;  %s2117_s3 = int_to_ptr.vmem [resolvable:$true] %s2116_s3 }
0x1059   :  { %v2099_v63 = vmul.f32 %v2186_v38, %v2090_v59  ;;  %s2539_s12 = scalar_lea.vmem %s2117_s3, 256  ;;  %p2544_p3 = scmp.lt.s32.totalorder %s2117_s3, %s2117_s3 }
0x105a   :  { %v2098_v0 = vmul.f32 %v2186_v38, %v2089_v60  ;;  %p2540_p2 = scmp.ne.s32.totalorder %s2117_s3, %s2539_s12  ;;  %p2545_p4 = scmp.lt.s32.totalorder %s2539_s12, %s2539_s12 }
0x105b   :  { %v2108_v1 = vadd.f32 %v2187_v62, %v2099_v63 }
0x105c   :  { %v2107_v2 = vadd.f32 %v2187_v62, %v2098_v0  ;;  %p2546_p5 = por %p2545_p4, %p2544_p3 }
0x105d   :  { %2110 = vst.msk [vmem:[#allocation5 + $0x8] sm:$0xff] %vm62_vm0, %v2108_v1 }
0x105e   :  { %2109 = vst.msk [vmem:[#allocation5] sm:$0xff] %vm62_vm0, %v2107_v2  ;;  %p2547_p6 = pnand %p2546_p5, %p2540_p2 }
0x1060   :  { %2550 = shalt.err (!%p2547_p6)
}
0x1061   :  { %s2551_s29 = scalar_lea.hbm %s2976_s11, 256 }
0x1062   :  { %p2552_p7 = scmp.ne.s32.totalorder %s2976_s11, %s2551_s29  ;;  %p2555_p8 = scmp.lt.u32.totalorder %s2551_s29, %s2976_s11 }
0x1064   :  { %p2557_p9 = pnand %p2555_p8, %p2552_p7 }
0x1066   :  { %2560 = shalt.err (!%p2557_p9)
}
0x1067   :  { %2122 = dma.vmem_to_hbm [thread:$0]  %s2117_s3, 256, %s2976_s11, [#allocation4], %s2568_s13, %s2568_s13, %s2569_s14  }
0x1068   :  { %2563 = dma.done.wait [#allocation4], 256  }
0x1069   :  { %2564 = vsyncadd [#allocation4], 4294967040 }
0x106a   :  { %2565 = dma.done.wait [#allocation7], 256  }
0x106b   :  { %2566 = vsyncadd [#allocation7], 4294967040 }
0x106c   :  { %2141 = vsyncpa [#allocation3], 1 }
0x106d   :  { %2142 = vsyncpa [#allocation4], 1 }
0x106e   :  { %2143 = vsyncpa [#allocation7], 1 }

</bundles_post_ra>
